<compile_context>
chip_gen: v7x
topology: tpu7x:2x2x1
jax: 0.10.0
libtpu: 0.0.40
codegen_flags: <defaults>
</compile_context>

<pallas_src>
import numpy as np
import jax
import jax.numpy as jnp
from jax import lax
from jax.experimental import pallas as pl
from jax.experimental.pallas import tpu as pltpu


# ----------------------------------------------------------------------------
# helpers
# ----------------------------------------------------------------------------

def _round_up(x, m):
    return (x + m - 1) // m * m


def _pick_tm(rows, cap=512):
    # Row tile: full (rounded to sublane multiple) when small, capped otherwise
    # so VMEM stays bounded (~30 MiB live at n_fft=1024, well under v7x's 64 MiB).
    if rows <= cap:
        return _round_up(rows, 8)
    return cap


def _row_cparams():
    return pltpu.CompilerParams(
        dimension_semantics=("parallel",),
        vmem_limit_bytes=48 * 1024 * 1024,
    )


# ----------------------------------------------------------------------------
# Pallas kernels (factories bake static constants: lane split point, momentum)
# ----------------------------------------------------------------------------

def _make_inv_mel_kernel(inv_power):
    def kernel(mel_ref, w_ref, out_ref):
        acc = jnp.dot(mel_ref[...], w_ref[...], preferred_element_type=jnp.float32)
        acc = jnp.maximum(acc, 0.0)
        if inv_power == 0.5:
            out_ref[...] = jnp.sqrt(acc)
        elif inv_power == 1.0:
            out_ref[...] = acc
        else:
            out_ref[...] = jnp.power(acc, inv_power)
    return kernel


def _make_istft_kernel(fp):
    def kernel(mag_ref, ang_ref, mat_ref, out_ref):
        mag = mag_ref[...]                                   # (TM, fp)
        ang = ang_ref[...]                                   # (TM, 2*fp)
        spec = jnp.concatenate([mag * ang[:, :fp], mag * ang[:, fp:]], axis=-1)
        out_ref[...] = jnp.dot(spec, mat_ref[...],
                               preferred_element_type=jnp.float32)
    return kernel


def _make_stft_phase_kernel(fp, coef):
    def kernel(frames_ref, mat_ref, prev_ref, cur_ref, ang_ref):
        cur = jnp.dot(frames_ref[...], mat_ref[...],
                      preferred_element_type=jnp.float32)    # (TM, 2*fp)
        cur_ref[...] = cur
        n = cur - coef * prev_ref[...]
        nr = n[:, :fp]
        ni = n[:, fp:]
        inv = pl.reciprocal(jnp.sqrt(nr * nr + ni * ni) + 1e-16, approx=True)
        ang_ref[...] = jnp.concatenate([nr * inv, ni * inv], axis=-1)
    return kernel


# ----------------------------------------------------------------------------
# pallas_call wrappers (row-tiled, pipelined, resident matrices)
# ----------------------------------------------------------------------------

def pallas_inv_mel_mag(mel, w, tm, inv_power):
    rows, n_mels = mel.shape
    fp = w.shape[1]
    return pl.pallas_call(
        _make_inv_mel_kernel(inv_power),
        out_shape=jax.ShapeDtypeStruct((rows, fp), jnp.float32),
        grid=(rows // tm,),
        in_specs=[
            pl.BlockSpec((tm, n_mels), lambda i: (i, 0)),
            pl.BlockSpec((n_mels, fp), lambda i: (0, 0)),
        ],
        out_specs=pl.BlockSpec((tm, fp), lambda i: (i, 0)),
        compiler_params=_row_cparams(),
        cost_estimate=pl.CostEstimate(
            flops=2 * rows * n_mels * fp,
            transcendentals=rows * fp,
            bytes_accessed=4 * (rows * n_mels + n_mels * fp + rows * fp)),
    )(mel, w)


def pallas_istft(mag, ang, idft, tm, fp):
    rows = mag.shape[0]
    n_fft = idft.shape[1]
    return pl.pallas_call(
        _make_istft_kernel(fp),
        out_shape=jax.ShapeDtypeStruct((rows, n_fft), jnp.float32),
        grid=(rows // tm,),
        in_specs=[
            pl.BlockSpec((tm, fp), lambda i: (i, 0)),
            pl.BlockSpec((tm, 2 * fp), lambda i: (i, 0)),
            pl.BlockSpec((2 * fp, n_fft), lambda i: (0, 0)),
        ],
        out_specs=pl.BlockSpec((tm, n_fft), lambda i: (i, 0)),
        compiler_params=_row_cparams(),
        cost_estimate=pl.CostEstimate(
            flops=2 * rows * 2 * fp * n_fft,
            transcendentals=0,
            bytes_accessed=4 * (rows * fp + rows * 2 * fp
                                + 2 * fp * n_fft + rows * n_fft)),
    )(mag, ang, idft)


def pallas_stft_phase(frames, dft, prev, tm, fp, coef):
    rows, n_fft = frames.shape
    out_sd = jax.ShapeDtypeStruct((rows, 2 * fp), jnp.float32)
    return pl.pallas_call(
        _make_stft_phase_kernel(fp, coef),
        out_shape=(out_sd, out_sd),
        grid=(rows // tm,),
        in_specs=[
            pl.BlockSpec((tm, n_fft), lambda i: (i, 0)),
            pl.BlockSpec((n_fft, 2 * fp), lambda i: (0, 0)),
            pl.BlockSpec((tm, 2 * fp), lambda i: (i, 0)),
        ],
        out_specs=(pl.BlockSpec((tm, 2 * fp), lambda i: (i, 0)),
                   pl.BlockSpec((tm, 2 * fp), lambda i: (i, 0))),
        compiler_params=_row_cparams(),
        cost_estimate=pl.CostEstimate(
            flops=2 * rows * n_fft * 2 * fp,
            transcendentals=2 * rows * fp,
            bytes_accessed=4 * (rows * n_fft + n_fft * 2 * fp
                                + 3 * rows * 2 * fp)),
    )(frames, dft, prev)


# ----------------------------------------------------------------------------
# Deterministic parameter construction (torchaudio defaults: htk mel, no norm,
# periodic Hann window).
# ----------------------------------------------------------------------------

def _hz_to_mel(f):
    return 2595.0 * np.log10(1.0 + f / 700.0)


def _mel_to_hz(m):
    return 700.0 * (10.0 ** (m / 2595.0) - 1.0)


def melscale_fbanks(n_freqs, n_mels, sample_rate, f_min=0.0, f_max=None):
    f_max = f_max if f_max is not None else sample_rate / 2.0
    all_freqs = np.linspace(0.0, sample_rate // 2, n_freqs)
    m_pts = np.linspace(_hz_to_mel(f_min), _hz_to_mel(f_max), n_mels + 2)
    f_pts = _mel_to_hz(m_pts)
    f_diff = f_pts[1:] - f_pts[:-1]                      # (n_mels + 1,)
    slopes = f_pts[None, :] - all_freqs[:, None]         # (n_freqs, n_mels + 2)
    down = -slopes[:, :-2] / f_diff[:-1]
    up = slopes[:, 2:] / f_diff[1:]
    fb = np.maximum(0.0, np.minimum(down, up))
    return fb.astype(np.float32)                         # (n_freqs, n_mels)


class MelToWaveformPallas:
    def __init__(self, sample_rate=16000, n_fft=1024, n_mels=80, hop_length=256,
                 n_iter=32, momentum=0.99, power=2.0):
        assert n_fft % 2 == 0
        self.sample_rate = sample_rate
        self.n_fft = n_fft
        self.n_mels = n_mels
        self.hop_length = hop_length
        self.n_iter = n_iter
        self.momentum = momentum
        self.power = power
        self.inv_power = 1.0 / power
        self.coef = momentum / (1.0 + momentum) if momentum > 0 else 0.0

        n_freq = n_fft // 2 + 1
        self.n_freq = n_freq
        fp = _round_up(n_freq, 128)           # lane-dense frequency padding
        self.fp = fp

        # --- InverseMelScale: min-norm least-squares operator (pinv of fb^T),
        #     zero-padded to fp lanes so the Griffin-Lim loop stays lane-dense.
        fb = melscale_fbanks(n_freq, n_mels, sample_rate)    # (n_freq, n_mels)
        w = np.linalg.pinv(fb.T).astype(np.float32)          # (n_freq, n_mels)
        w_pad = np.zeros((n_mels, fp), np.float32)
        w_pad[:, :n_freq] = w.T
        self.w_pad = jnp.asarray(w_pad)

        # periodic Hann window (torch.hann_window default)
        win = 0.5 * (1.0 - np.cos(2.0 * np.pi * np.arange(n_fft) / n_fft))
        self.win_np = win.astype(np.float64)

        # --- analysis: diag(win) @ [cos | -sin], padded to (n_fft, 2*fp)
        n = np.arange(n_fft)
        k = np.arange(n_freq)
        ang = 2.0 * np.pi * np.outer(n, k) / n_fft           # (n_fft, n_freq)
        dft = np.zeros((n_fft, 2 * fp), np.float64)
        dft[:, :n_freq] = self.win_np[:, None] * np.cos(ang)
        dft[:, fp:fp + n_freq] = self.win_np[:, None] * (-np.sin(ang))
        self.dft = jnp.asarray(dft.astype(np.float32))

        # --- synthesis: [icos; isin] with onesided doubling and the synthesis
        #     window folded into the columns, padded rows -> (2*fp, n_fft)
        c = np.ones(n_freq, np.float64)
        c[1:-1] = 2.0
        iang = 2.0 * np.pi * np.outer(k, n) / n_fft          # (n_freq, n_fft)
        idft = np.zeros((2 * fp, n_fft), np.float64)
        idft[:n_freq, :] = (c[:, None] * np.cos(iang) / n_fft) * self.win_np[None, :]
        idft[fp:fp + n_freq, :] = (-c[:, None] * np.sin(iang) / n_fft) * self.win_np[None, :]
        self.idft = jnp.asarray(idft.astype(np.float32))

    # ------------------------- static (trace-time) glue ----------------------

    def _inv_envelope(self, t_frames):
        # Loop-invariant OLA window-squared envelope, computed once in numpy.
        n_fft, hop = self.n_fft, self.hop_length
        wsq = self.win_np ** 2
        env = np.zeros((t_frames - 1) * hop + n_fft, np.float64)
        for ti in range(t_frames):
            env[ti * hop: ti * hop + n_fft] += wsq
        pad = n_fft // 2
        out_len = (t_frames - 1) * hop
        env = env[pad: pad + out_len]
        # TODO(synk): torch.istft asserts the OLA window envelope is nonzero; we clamp.
        return jnp.asarray((1.0 / np.maximum(env, 1e-11)).astype(np.float32))

    def _frame(self, wav, rows_pad):
        # wav: (B, L) -> (rows_pad, n_fft); scatter/gather-free framing when
        # n_fft % hop == 0 (static slices of non-overlapping hop chunks).
        b, length = wav.shape
        n_fft, hop = self.n_fft, self.hop_length
        pad = n_fft // 2
        padded = jnp.pad(wav, ((0, 0), (pad, pad)), mode="reflect")
        t_frames = length // hop + 1
        if n_fft % hop == 0 and (length + n_fft) % hop == 0:
            r = n_fft // hop
            chunks = padded.reshape(b, t_frames - 1 + r, hop)
            frames = jnp.concatenate(
                [chunks[:, ri:ri + t_frames, :] for ri in range(r)], axis=-1)
        else:
            # TODO(synk): general hop (n_fft % hop != 0) falls back to an XLA gather.
            idx = (jnp.arange(t_frames)[:, None] * hop + jnp.arange(n_fft)[None, :])
            frames = padded[:, idx]
        frames = frames.reshape(b * t_frames, n_fft)
        rows = b * t_frames
        if rows_pad != rows:
            frames = jnp.pad(frames, ((0, rows_pad - rows), (0, 0)))
        return frames

    def _overlap_add(self, frames_bt):
        # frames_bt: (B, T, n_fft) -> (B, (T-1)*hop + n_fft), static fold (no scatter).
        b, t, n_fft = frames_bt.shape
        hop = self.hop_length
        if n_fft % hop == 0:
            r = n_fft // hop
            total = t - 1 + r
            f = frames_bt.reshape(b, t, r, hop)
            acc = jnp.zeros((b, total, hop), frames_bt.dtype)
            for ri in range(r):
                acc = acc + jnp.pad(f[:, :, ri, :],
                                    ((0, 0), (ri, r - 1 - ri), (0, 0)))
            return acc.reshape(b, total * hop)
        # TODO(synk): general hop falls back to scatter-add overlap-add.
        out_len = (t - 1) * hop + n_fft
        idx = (jnp.arange(t)[:, None] * hop + jnp.arange(n_fft)[None, :]).reshape(-1)

        def ola_one(fr):
            return jnp.zeros((out_len,), fr.dtype).at[idx].add(fr.reshape(-1))

        return jax.vmap(ola_one)(frames_bt)

    # ---------------------------- ISTFT (per iteration) ----------------------

    def _istft(self, mag, ang, b, t_frames, rows, tm, inv_env):
        wframes = pallas_istft(mag, ang, self.idft, tm, self.fp)   # (rows_pad, n_fft)
        wframes = wframes[:rows].reshape(b, t_frames, self.n_fft)
        y = self._overlap_add(wframes)
        pad = self.n_fft // 2
        out_len = (t_frames - 1) * self.hop_length
        return y[:, pad:pad + out_len] * inv_env[None, :]

    # ---------------------------- forward pass -------------------------------

    def __call__(self, mel):
        # mel: (B, n_mels, T), same layout as the PyTorch module.
        b, n_mels, t = mel.shape
        rows = b * t
        tm = _pick_tm(rows)
        rows_pad = _round_up(rows, tm)

        mel_t = jnp.transpose(mel, (0, 2, 1)).reshape(rows, n_mels).astype(jnp.float32)
        if rows_pad != rows:
            mel_t = jnp.pad(mel_t, ((0, rows_pad - rows), (0, 0)))

        # InverseMelScale (lstsq + clamp>=0) fused with |.|^(1/power) -> magnitude.
        mag = pallas_inv_mel_mag(mel_t, self.w_pad, tm, self.inv_power)  # (rows_pad, fp)

        inv_env = self._inv_envelope(t)

        # initial phases (torchaudio rand_init=True; deterministic JAX RNG here;
        # padded rows/lanes are harmless: mag is zero there).
        ang0 = jax.random.uniform(jax.random.PRNGKey(0),
                                  (rows_pad, 2 * self.fp), jnp.float32)
        prev0 = jnp.zeros((rows_pad, 2 * self.fp), jnp.float32)

        def body(_, carry):
            ang, prev = carry
            wav = self._istft(mag, ang, b, t, rows, tm, inv_env)
            # TODO(synk): framing still materializes 4x-redundant frames in HBM;
            # an in-kernel memory_space=pl.ANY DMA would cut that traffic.
            frames = self._frame(wav, rows_pad)
            cur, new_ang = pallas_stft_phase(frames, self.dft, prev, tm,
                                             self.fp, self.coef)
            return new_ang, cur

        ang, _ = lax.fori_loop(0, self.n_iter, body, (ang0, prev0))
        return self._istft(mag, ang, b, t, rows, tm, inv_env)   # (B, (T-1)*hop)


# ----------------------------------------------------------------------------

if __name__ == "__main__":
    # Small, consistent shapes: B=2, n_mels=16 mel channels, T=8 time frames,
    # n_fft=128 (n_freq=65 -> padded 128 lanes), hop=32 -> waveform (T-1)*hop = 224.
    B, N_MELS, T = 2, 16, 8
    model = MelToWaveformPallas(sample_rate=16000, n_fft=128, n_mels=N_MELS,
                                hop_length=32, n_iter=32)

    key = jax.random.PRNGKey(0)
    mel = jax.random.uniform(key, (B, N_MELS, T), dtype=jnp.float32)

    wav = jax.jit(model.__call__)(mel)
    wav = jax.block_until_ready(wav)

    assert wav.shape == (B, (T - 1) * 32), wav.shape
    assert bool(jnp.all(jnp.isfinite(wav)))
    print("KERNEL_OK")
</pallas_src>

<mosaic_0001>
module attributes {stable_mosaic.version = 11 : i64} {
  func.func @kernel(%arg0: i32, %arg1: memref<16x16xf32, #tpu.memory_space<vmem>>, %arg2: memref<16x128xf32, #tpu.memory_space<vmem>>, %arg3: memref<16x128xf32, #tpu.memory_space<vmem>>) attributes {dimension_semantics = [#tpu.dimension_semantics<parallel>], iteration_bounds = array<i64: 1>, scalar_prefetch = 0 : i64, scratch_operands = 0 : i64, tpu.core_type = #tpu.core_type<tc>, window_params = [{transform_indices = @transform_0, window_bounds = array<i64: 16, 16>}, {pipeline_mode = #tpu.pipeline_mode<synchronous>, transform_indices = @transform_1, window_bounds = array<i64: 16, 128>}, {transform_indices = @transform_2, window_bounds = array<i64: 16, 128>}]} {
    %c0 = arith.constant 0 : index
    %c0_0 = arith.constant 0 : index
    %0 = vector.load %arg1[%c0, %c0_0] : memref<16x16xf32, #tpu.memory_space<vmem>>, vector<16x16xf32>
    %c0_1 = arith.constant 0 : index
    %c0_2 = arith.constant 0 : index
    %1 = vector.load %arg2[%c0_1, %c0_2] : memref<16x128xf32, #tpu.memory_space<vmem>>, vector<16x128xf32>
    %cst = arith.constant dense<0.000000e+00> : vector<16x128xf32>
    %2 = tpu.matmul %0, %1, %cst {dimension_numbers = #tpu.dot_dimension_numbers<[1], [0], [0], [1], [0, 0, 1, 1], [], []>} : vector<16x16xf32>, vector<16x128xf32>, vector<16x128xf32> -> vector<16x128xf32>
    %cst_3 = arith.constant 0.000000e+00 : f32
    %3 = vector.broadcast %cst_3 : f32 to vector<16x128xf32>
    %4 = arith.maximumf %2, %3 : vector<16x128xf32>
    %5 = math.sqrt %4 : vector<16x128xf32>
    %c0_4 = arith.constant 0 : index
    %c0_5 = arith.constant 0 : index
    %6 = vector.load %arg3[%c0_4, %c0_5] : memref<16x128xf32, #tpu.memory_space<vmem>>, vector<16x128xf32>
    tpu.vector_store %arg3[%c0_4, %c0_5], %5 {strides = array<i32>} : memref<16x128xf32, #tpu.memory_space<vmem>>, vector<16x128xf32>,
    return
  }
  func.func @transform_0(%arg0: i32) -> (i32, i32) {
    %c0_i32 = arith.constant 0 : i32
    %c0_i32_0 = arith.constant 0 : i32
    return %arg0, %c0_i32 : i32, i32
  }
  func.func @transform_1(%arg0: i32) -> (i32, i32) {
    %c0_i32 = arith.constant 0 : i32
    %c0_i32_0 = arith.constant 0 : i32
    %c0_i32_1 = arith.constant 0 : i32
    return %c0_i32, %c0_i32_0 : i32, i32
  }
  func.func @transform_2(%arg0: i32) -> (i32, i32) {
    %c0_i32 = arith.constant 0 : i32
    %c0_i32_0 = arith.constant 0 : i32
    return %arg0, %c0_i32 : i32, i32
  }
}

module attributes {stable_mosaic.version = 11 : i64} {
  func.func @kernel(%arg0: i32, %arg1: memref<16x128xf32, #tpu.memory_space<vmem>>, %arg2: memref<16x256xf32, #tpu.memory_space<vmem>>, %arg3: memref<256x128xf32, #tpu.memory_space<vmem>>, %arg4: memref<16x128xf32, #tpu.memory_space<vmem>>) attributes {dimension_semantics = [#tpu.dimension_semantics<parallel>], iteration_bounds = array<i64: 1>, scalar_prefetch = 0 : i64, scratch_operands = 0 : i64, tpu.core_type = #tpu.core_type<tc>, window_params = [{transform_indices = @transform_0, window_bounds = array<i64: 16, 128>}, {transform_indices = @transform_1, window_bounds = array<i64: 16, 256>}, {pipeline_mode = #tpu.pipeline_mode<synchronous>, transform_indices = @transform_2, window_bounds = array<i64: 256, 128>}, {transform_indices = @transform_3, window_bounds = array<i64: 16, 128>}]} {
    %c0 = arith.constant 0 : index
    %c0_0 = arith.constant 0 : index
    %0 = vector.load %arg1[%c0, %c0_0] : memref<16x128xf32, #tpu.memory_space<vmem>>, vector<16x128xf32>
    %c0_1 = arith.constant 0 : index
    %c0_2 = arith.constant 0 : index
    %1 = vector.load %arg2[%c0_1, %c0_2] : memref<16x256xf32, #tpu.memory_space<vmem>>, vector<16x256xf32>
    %2 = vector.extract_strided_slice %1 {offsets = [0, 0], sizes = [16, 128], strides = [1, 1]} : vector<16x256xf32> to vector<16x128xf32>
    %3 = arith.mulf %0, %2 : vector<16x128xf32>
    %4 = vector.extract_strided_slice %1 {offsets = [0, 128], sizes = [16, 128], strides = [1, 1]} : vector<16x256xf32> to vector<16x128xf32>
    %5 = arith.mulf %0, %4 : vector<16x128xf32>
    %6 = tpu.concatenate %3, %5 in 1 : vector<16x128xf32>, vector<16x128xf32> -> vector<16x256xf32>
    %c0_3 = arith.constant 0 : index
    %c0_4 = arith.constant 0 : index
    %7 = vector.load %arg3[%c0_3, %c0_4] : memref<256x128xf32, #tpu.memory_space<vmem>>, vector<256x128xf32>
    %cst = arith.constant dense<0.000000e+00> : vector<16x128xf32>
    %8 = tpu.matmul %6, %7, %cst {dimension_numbers = #tpu.dot_dimension_numbers<[1], [0], [0], [1], [0, 0, 1, 1], [], []>} : vector<16x256xf32>, vector<256x128xf32>, vector<16x128xf32> -> vector<16x128xf32>
    %c0_5 = arith.constant 0 : index
    %c0_6 = arith.constant 0 : index
    %9 = vector.load %arg4[%c0_5, %c0_6] : memref<16x128xf32, #tpu.memory_space<vmem>>, vector<16x128xf32>
    tpu.vector_store %arg4[%c0_5, %c0_6], %8 {strides = array<i32>} : memref<16x128xf32, #tpu.memory_space<vmem>>, vector<16x128xf32>,
    return
  }
  func.func @transform_0(%arg0: i32) -> (i32, i32) {
    %c0_i32 = arith.constant 0 : i32
    %c0_i32_0 = arith.constant 0 : i32
    return %arg0, %c0_i32 : i32, i32
  }
  func.func @transform_1(%arg0: i32) -> (i32, i32) {
    %c0_i32 = arith.constant 0 : i32
    %c0_i32_0 = arith.constant 0 : i32
    return %arg0, %c0_i32 : i32, i32
  }
  func.func @transform_2(%arg0: i32) -> (i32, i32) {
    %c0_i32 = arith.constant 0 : i32
    %c0_i32_0 = arith.constant 0 : i32
    %c0_i32_1 = arith.constant 0 : i32
    return %c0_i32, %c0_i32_0 : i32, i32
  }
  func.func @transform_3(%arg0: i32) -> (i32, i32) {
    %c0_i32 = arith.constant 0 : i32
    %c0_i32_0 = arith.constant 0 : i32
    return %arg0, %c0_i32 : i32, i32
  }
}

module attributes {stable_mosaic.version = 11 : i64} {
  func.func @kernel(%arg0: i32, %arg1: memref<16x128xf32, #tpu.memory_space<vmem>>, %arg2: memref<16x256xf32, #tpu.memory_space<vmem>>, %arg3: memref<256x128xf32, #tpu.memory_space<vmem>>, %arg4: memref<16x128xf32, #tpu.memory_space<vmem>>) attributes {dimension_semantics = [#tpu.dimension_semantics<parallel>], iteration_bounds = array<i64: 1>, scalar_prefetch = 0 : i64, scratch_operands = 0 : i64, tpu.core_type = #tpu.core_type<tc>, window_params = [{transform_indices = @transform_0, window_bounds = array<i64: 16, 128>}, {transform_indices = @transform_1, window_bounds = array<i64: 16, 256>}, {pipeline_mode = #tpu.pipeline_mode<synchronous>, transform_indices = @transform_2, window_bounds = array<i64: 256, 128>}, {transform_indices = @transform_3, window_bounds = array<i64: 16, 128>}]} {
    %c0 = arith.constant 0 : index
    %c0_0 = arith.constant 0 : index
    %0 = vector.load %arg1[%c0, %c0_0] : memref<16x128xf32, #tpu.memory_space<vmem>>, vector<16x128xf32>
    %c0_1 = arith.constant 0 : index
    %c0_2 = arith.constant 0 : index
    %1 = vector.load %arg2[%c0_1, %c0_2] : memref<16x256xf32, #tpu.memory_space<vmem>>, vector<16x256xf32>
    %2 = vector.extract_strided_slice %1 {offsets = [0, 0], sizes = [16, 128], strides = [1, 1]} : vector<16x256xf32> to vector<16x128xf32>
    %3 = arith.mulf %0, %2 : vector<16x128xf32>
    %4 = vector.extract_strided_slice %1 {offsets = [0, 128], sizes = [16, 128], strides = [1, 1]} : vector<16x256xf32> to vector<16x128xf32>
    %5 = arith.mulf %0, %4 : vector<16x128xf32>
    %6 = tpu.concatenate %3, %5 in 1 : vector<16x128xf32>, vector<16x128xf32> -> vector<16x256xf32>
    %c0_3 = arith.constant 0 : index
    %c0_4 = arith.constant 0 : index
    %7 = vector.load %arg3[%c0_3, %c0_4] : memref<256x128xf32, #tpu.memory_space<vmem>>, vector<256x128xf32>
    %cst = arith.constant dense<0.000000e+00> : vector<16x128xf32>
    %8 = tpu.matmul %6, %7, %cst {dimension_numbers = #tpu.dot_dimension_numbers<[1], [0], [0], [1], [0, 0, 1, 1], [], []>} : vector<16x256xf32>, vector<256x128xf32>, vector<16x128xf32> -> vector<16x128xf32>
    %c0_5 = arith.constant 0 : index
    %c0_6 = arith.constant 0 : index
    %9 = vector.load %arg4[%c0_5, %c0_6] : memref<16x128xf32, #tpu.memory_space<vmem>>, vector<16x128xf32>
    tpu.vector_store %arg4[%c0_5, %c0_6], %8 {strides = array<i32>} : memref<16x128xf32, #tpu.memory_space<vmem>>, vector<16x128xf32>,
    return
  }
  func.func @transform_0(%arg0: i32) -> (i32, i32) {
    %c0_i32 = arith.constant 0 : i32
    %c0_i32_0 = arith.constant 0 : i32
    return %arg0, %c0_i32 : i32, i32
  }
  func.func @transform_1(%arg0: i32) -> (i32, i32) {
    %c0_i32 = arith.constant 0 : i32
    %c0_i32_0 = arith.constant 0 : i32
    return %arg0, %c0_i32 : i32, i32
  }
  func.func @transform_2(%arg0: i32) -> (i32, i32) {
    %c0_i32 = arith.constant 0 : i32
    %c0_i32_0 = arith.constant 0 : i32
    %c0_i32_1 = arith.constant 0 : i32
    return %c0_i32, %c0_i32_0 : i32, i32
  }
  func.func @transform_3(%arg0: i32) -> (i32, i32) {
    %c0_i32 = arith.constant 0 : i32
    %c0_i32_0 = arith.constant 0 : i32
    return %arg0, %c0_i32 : i32, i32
  }
}

module attributes {stable_mosaic.version = 11 : i64} {
  func.func @kernel(%arg0: i32, %arg1: memref<16x128xf32, #tpu.memory_space<vmem>>, %arg2: memref<128x256xf32, #tpu.memory_space<vmem>>, %arg3: memref<16x256xf32, #tpu.memory_space<vmem>>, %arg4: memref<16x256xf32, #tpu.memory_space<vmem>>, %arg5: memref<16x256xf32, #tpu.memory_space<vmem>>) attributes {dimension_semantics = [#tpu.dimension_semantics<parallel>], iteration_bounds = array<i64: 1>, scalar_prefetch = 0 : i64, scratch_operands = 0 : i64, tpu.core_type = #tpu.core_type<tc>, window_params = [{transform_indices = @transform_0, window_bounds = array<i64: 16, 128>}, {pipeline_mode = #tpu.pipeline_mode<synchronous>, transform_indices = @transform_1, window_bounds = array<i64: 128, 256>}, {transform_indices = @transform_2, window_bounds = array<i64: 16, 256>}, {transform_indices = @transform_3, window_bounds = array<i64: 16, 256>}, {transform_indices = @transform_4, window_bounds = array<i64: 16, 256>}]} {
    %c0 = arith.constant 0 : index
    %c0_0 = arith.constant 0 : index
    %0 = vector.load %arg1[%c0, %c0_0] : memref<16x128xf32, #tpu.memory_space<vmem>>, vector<16x128xf32>
    %c0_1 = arith.constant 0 : index
    %c0_2 = arith.constant 0 : index
    %1 = vector.load %arg2[%c0_1, %c0_2] : memref<128x256xf32, #tpu.memory_space<vmem>>, vector<128x256xf32>
    %cst = arith.constant dense<0.000000e+00> : vector<16x256xf32>
    %2 = tpu.matmul %0, %1, %cst {dimension_numbers = #tpu.dot_dimension_numbers<[1], [0], [0], [1], [0, 0, 1, 1], [], []>} : vector<16x128xf32>, vector<128x256xf32>, vector<16x256xf32> -> vector<16x256xf32>
    %c0_3 = arith.constant 0 : index
    %c0_4 = arith.constant 0 : index
    %3 = vector.load %arg4[%c0_3, %c0_4] : memref<16x256xf32, #tpu.memory_space<vmem>>, vector<16x256xf32>
    tpu.vector_store %arg4[%c0_3, %c0_4], %2 {strides = array<i32>} : memref<16x256xf32, #tpu.memory_space<vmem>>, vector<16x256xf32>,
    %c0_5 = arith.constant 0 : index
    %c0_6 = arith.constant 0 : index
    %4 = vector.load %arg3[%c0_5, %c0_6] : memref<16x256xf32, #tpu.memory_space<vmem>>, vector<16x256xf32>
    %cst_7 = arith.constant 0.497487426 : f32
    %5 = vector.broadcast %cst_7 : f32 to vector<16x256xf32>
    %6 = arith.mulf %5, %4 : vector<16x256xf32>
    %7 = arith.subf %2, %6 : vector<16x256xf32>
    %8 = vector.extract_strided_slice %7 {offsets = [0, 0], sizes = [16, 128], strides = [1, 1]} : vector<16x256xf32> to vector<16x128xf32>
    %9 = vector.extract_strided_slice %7 {offsets = [0, 128], sizes = [16, 128], strides = [1, 1]} : vector<16x256xf32> to vector<16x128xf32>
    %10 = arith.mulf %8, %8 : vector<16x128xf32>
    %11 = arith.mulf %9, %9 : vector<16x128xf32>
    %12 = arith.addf %10, %11 : vector<16x128xf32>
    %13 = math.sqrt %12 : vector<16x128xf32>
    %cst_8 = arith.constant 1.000000e-16 : f32
    %14 = vector.broadcast %cst_8 : f32 to vector<16x128xf32>
    %15 = arith.addf %13, %14 : vector<16x128xf32>
    %16 = tpu.reciprocal %15 {approx = true} : vector<16x128xf32> -> vector<16x128xf32>
    %17 = arith.mulf %8, %16 : vector<16x128xf32>
    %18 = arith.mulf %9, %16 : vector<16x128xf32>
    %19 = tpu.concatenate %17, %18 in 1 : vector<16x128xf32>, vector<16x128xf32> -> vector<16x256xf32>
    %c0_9 = arith.constant 0 : index
    %c0_10 = arith.constant 0 : index
    %20 = vector.load %arg5[%c0_9, %c0_10] : memref<16x256xf32, #tpu.memory_space<vmem>>, vector<16x256xf32>
    tpu.vector_store %arg5[%c0_9, %c0_10], %19 {strides = array<i32>} : memref<16x256xf32, #tpu.memory_space<vmem>>, vector<16x256xf32>,
    return
  }
  func.func @transform_0(%arg0: i32) -> (i32, i32) {
    %c0_i32 = arith.constant 0 : i32
    %c0_i32_0 = arith.constant 0 : i32
    return %arg0, %c0_i32 : i32, i32
  }
  func.func @transform_1(%arg0: i32) -> (i32, i32) {
    %c0_i32 = arith.constant 0 : i32
    %c0_i32_0 = arith.constant 0 : i32
    %c0_i32_1 = arith.constant 0 : i32
    return %c0_i32, %c0_i32_0 : i32, i32
  }
  func.func @transform_2(%arg0: i32) -> (i32, i32) {
    %c0_i32 = arith.constant 0 : i32
    %c0_i32_0 = arith.constant 0 : i32
    return %arg0, %c0_i32 : i32, i32
  }
  func.func @transform_3(%arg0: i32) -> (i32, i32) {
    %c0_i32 = arith.constant 0 : i32
    %c0_i32_0 = arith.constant 0 : i32
    return %arg0, %c0_i32 : i32, i32
  }
  func.func @transform_4(%arg0: i32) -> (i32, i32) {
    %c0_i32 = arith.constant 0 : i32
    %c0_i32_0 = arith.constant 0 : i32
    return %arg0, %c0_i32 : i32, i32
  }
}

</mosaic_0001>

<bundles_post_ra>
// kernel: a_call__.2
= control target key start
LH: loop header
LB: loop body
LE: loop exit
PB: predicated region body
PF: predicated region fallthrough
CT: control target
= control target key end

     0   :  { %vm15_vm0 = vcmask 130048   ;;  %s173_s1 = inlined_call_operand.vmem [shape: f32[16,128], index: 1, kind: input, shape index: {}]   ;;  %s174_s0 = inlined_call_operand.vmem [shape: f32[16,16], index: 0, kind: input, shape index: {}]   ;;  %s175_s2 = inlined_call_operand.vmem [shape: f32[16,128], index: 2, kind: output, shape index: {}]  }
   0x1   :  { %v13_v0 = vld [vmem:[%s173_s1] sm:$0xff]  ;;  %v14_v1 = vld [vmem:[%s173_s1 + $0x8] sm:$0xff] }
   0x2   :  { %v11_v2 = vld [vmem:[%s174_s0] sm:$0xff]  ;;  %v132_v3 = vpack.c.bf16 %v14_v1, %v13_v0  ;;  %v12_v4 = vld [vmem:[%s174_s0 + $0x8] sm:$0xff] }
   0x3   :  { %129 = vmatprep.mubr.msk.f32.mxu0 %vm15_vm0, %v11_v2 }
   0x4   :  { %133 = vmatprep.subr.bf16.mxu0 %v132_v3 }
   0x5   :  { %135 = vmatpush3.bf16.msra.mxu0 %v132_v3 }
   0x8   :  { %130 = vmatmul.mubr.msk.f32.vlgmr.msra.gmra.mrb[0].mxu0 %vm15_vm0, %v12_v4 }
  0xdb   :  { %v131_v5 = vpop.f32.mrb[0].mxu0 }
  0xdc   :  { %v98_v6 = vmax.f32 %v131_v5, 0.0  ;;  %v88_v7 = vpop.f32.mrb[1].mxu0 }
  0xdd   :  { %v97_v8 = vmax.f32 %v88_v7, 0.0 }
  0xde   :  { %136 = vrsqrt.f32 %v98_v6  ;;  %vm108_vm1 = vcmp.eq.f32.partialorder %v98_v6, inf  ;;  %v111_v12 = vand.u32 2147483648, %v98_v6  ;;  %vm110_vm2 = vcmp.eq.f32.partialorder %v98_v6, 0.0 }
  0xdf   :  { %138 = vrsqrt.f32 %v97_v8  ;;  %vm101_vm3 = vcmp.eq.f32.partialorder %v97_v8, inf  ;;  %v104_v15 = vand.u32 2147483648, %v97_v8  ;;  %vm103_vm4 = vcmp.eq.f32.partialorder %v97_v8, 0.0 }
  0xe8   :  { %v137_v9 = vpop.eup %136 }
  0xe9   :  { %v139_v10 = vpop.eup %138  ;;  %v107_v11 = vmul.f32 %v137_v9, %v98_v6 }
  0xea   :  { %v100_v13 = vmul.f32 %v139_v10, %v97_v8 }
  0xeb   :  { %v109_v14 = vsel %vm108_vm1, %v98_v6, %v107_v11 }
  0xec   :  { %v112_v16 = vsel %vm110_vm2, %v111_v12, %v109_v14  ;;  %v102_v17 = vsel %vm101_vm3, %v97_v8, %v100_v13 }
  0xed   :  { %114 = vst [vmem:[%s175_s2 + $0x8] sm:$0xff] %v112_v16  ;;  %v105_v18 = vsel %vm103_vm4, %v104_v15, %v102_v17 }
  0xee   :  { %113 = vst [vmem:[%s175_s2] sm:$0xff] %v105_v18 }

// kernel: closed_call.16
= control target key start
LH: loop header
LB: loop body
LE: loop exit
PB: predicated region body
PF: predicated region fallthrough
CT: control target
= control target key end

     0   :  { %8 = vsyncpa [#allocation3], 0  ;;  %s265_s12 = smov [#allocation2]   ;;  %s324_s0 = inlined_call_operand.vmem [shape: f32[16,128], index: 0, kind: input, shape index: {}]   ;;  %s325_s1 = inlined_call_operand.vmem [shape: f32[16,256], index: 1, kind: input, shape index: {}]   ;;  %s326_s2 = inlined_call_operand.hbm [shape: f32[256,128], index: 2, kind: input, shape index: {}]   ;;  %s327_s3 = inlined_call_operand.vmem [shape: f32[16,128], index: 3, kind: output, shape index: {}]  }
   0x1   :  { %s18_s13 = sshll.u32 %s265_s12, 4  ;;  %s241_s16 = scalar_lea.hbm %s326_s2, 4096  ;;  %s19_s13 = int_to_ptr.vmem [resolvable:$true] %s18_s13 }
   0x2   :  { %p242_p0 = scmp.ne.s32.totalorder %s326_s2, %s241_s16  ;;  %p245_p1 = scmp.lt.u32.totalorder %s241_s16, %s326_s2 }
   0x4   :  { %p247_p2 = pnand %p245_p1, %p242_p0 }
   0x6   :  { %250 = shalt.err (!%p247_p2)
}
   0x7   :  { %s251_s21 = scalar_lea.vmem %s19_s13, 4096  ;;  %p256_p4 = scmp.lt.s32.totalorder %s19_s13, %s19_s13 }
   0x8   :  { %p252_p3 = scmp.ne.s32.totalorder %s19_s13, %s251_s21  ;;  %p257_p5 = scmp.lt.s32.totalorder %s251_s21, %s251_s21 }
   0xa   :  { %p258_p6 = por %p257_p5, %p256_p4 }
   0xc   :  { %p259_p7 = pnand %p258_p6, %p252_p3 }
   0xe   :  { %262 = shalt.err (!%p259_p7)
}
   0xf   :  { %s266_s22 = smov 128   ;;  %s267_s23 = smov 8  }
  0x10   :  { %24 = dma.hbm_to_vmem [thread:$0]  %s326_s2, 4096, %s19_s13, [#allocation3], %s266_s22, %s266_s22, %s267_s23  }
  0x11   :  { %263 = dma.done.wait [#allocation3], 4096  }
  0x12   :  { %264 = vsyncadd [#allocation3], 4294963200  ;;  %v54_v0 = vld [vmem:[#allocation2 + $0x80] sm:$0xff]  ;;  %v55_v1 = vld [vmem:[#allocation2 + $0x88] sm:$0xff] }
  0x13   :  { %v38_v2 = vld [vmem:[#allocation2] sm:$0xff]  ;;  %v190_v3 = vpack.c.bf16 %v55_v1, %v54_v0  ;;  %v39_v4 = vld [vmem:[#allocation2 + $0x8] sm:$0xff]  ;;  %v56_v5 = vld [vmem:[#allocation2 + $0x90] sm:$0xff] }
  0x14   :  { %v57_v6 = vld [vmem:[#allocation2 + $0x98] sm:$0xff]  ;;  %v192_v7 = vpack.c.bf16 %v39_v4, %v38_v2  ;;  %v40_v9 = vld [vmem:[#allocation2 + $0x10] sm:$0xff]  ;;  %v58_v11 = vld [vmem:[#allocation2 + $0xa0] sm:$0xff] }
  0x15   :  { %v194_v8 = vpack.c.bf16 %v57_v6, %v56_v5  ;;  %v41_v10 = vld [vmem:[#allocation2 + $0x18] sm:$0xff]  ;;  %191 = vmatprep.subr.bf16.mxu0 %v190_v3  ;;  %222 = vmatprep.subr.bf16.mxu1 %v190_v3  ;;  %v59_v12 = vld [vmem:[#allocation2 + $0xa8] sm:$0xff]  ;;  %v42_v15 = vld [vmem:[#allocation2 + $0x20] sm:$0xff] }
  0x16   :  { %193 = vmatpush3.bf16.msra.mxu0 %v192_v7  ;;  %230 = vmatpush3.bf16.msra.mxu1 %v192_v7  ;;  %v196_v13 = vpack.c.bf16 %v41_v10, %v40_v9  ;;  %v198_v14 = vpack.c.bf16 %v59_v12, %v58_v11  ;;  %v43_v16 = vld [vmem:[#allocation2 + $0x28] sm:$0xff]  ;;  %v60_v17 = vld [vmem:[#allocation2 + $0xb0] sm:$0xff]  ;;  %v61_v18 = vld [vmem:[#allocation2 + $0xb8] sm:$0xff] }
  0x17   :  { %195 = vmatprep.subr.bf16.mxu0 %v194_v8  ;;  %223 = vmatprep.subr.bf16.mxu1 %v194_v8  ;;  %v200_v19 = vpack.c.bf16 %v43_v16, %v42_v15  ;;  %v202_v20 = vpack.c.bf16 %v61_v18, %v60_v17  ;;  %v44_v21 = vld [vmem:[#allocation2 + $0x30] sm:$0xff]  ;;  %v45_v22 = vld [vmem:[#allocation2 + $0x38] sm:$0xff]  ;;  %v62_v23 = vld [vmem:[#allocation2 + $0xc0] sm:$0xff] }
  0x18   :  { %v63_v24 = vld [vmem:[#allocation2 + $0xc8] sm:$0xff]  ;;  %v28_v25 = vld [vmem:[%s324_s0] sm:$0xff]  ;;  %v204_v28 = vpack.c.bf16 %v45_v22, %v44_v21  ;;  %v33_v30 = vld [vmem:[%s325_s1 + $0x18] sm:$0xff] }
  0x19   :  { %v31_v26 = vld [vmem:[%s325_s1 + $0x8] sm:$0xff]  ;;  %v206_v31 = vpack.c.bf16 %v63_v24, %v62_v23  ;;  %v46_v32 = vld [vmem:[#allocation2 + $0x40] sm:$0xff]  ;;  %v64_v35 = vld [vmem:[#allocation2 + $0xd0] sm:$0xff] }
  0x1a   :  { %197 = vmatpush3.bf16.msra.mxu0 %v196_v13  ;;  %231 = vmatpush3.bf16.msra.mxu1 %v196_v13  ;;  %v29_v27 = vld [vmem:[%s324_s0 + $0x8] sm:$0xff]  ;;  %v36_v29 = vmul.f32 %v31_v26, %v28_v25  ;;  %v65_v36 = vld [vmem:[#allocation2 + $0xd8] sm:$0xff]  ;;  %v48_v39 = vld [vmem:[#allocation2 + $0x50] sm:$0xff] }
  0x1b   :  { %199 = vmatprep.subr.bf16.mxu0 %v198_v14  ;;  %224 = vmatprep.subr.bf16.mxu1 %v198_v14  ;;  %v47_v33 = vld [vmem:[#allocation2 + $0x48] sm:$0xff]  ;;  %v37_v34 = vmul.f32 %v33_v30, %v29_v27  ;;  %v210_v38 = vpack.c.bf16 %v65_v36, %v64_v35  ;;  %v49_v40 = vld [vmem:[#allocation2 + $0x58] sm:$0xff]  ;;  %v66_v41 = vld [vmem:[#allocation2 + $0xe0] sm:$0xff] }
  0x1c   :  { %134 = vmatprep.mubr.f32.mxu0 %v36_v29  ;;  %v208_v37 = vpack.c.bf16 %v47_v33, %v46_v32  ;;  %v67_v42 = vld [vmem:[#allocation2 + $0xe8] sm:$0xff]  ;;  %v212_v43 = vpack.c.bf16 %v49_v40, %v48_v39  ;;  %v50_v45 = vld [vmem:[#allocation2 + $0x60] sm:$0xff]  ;;  %v68_v47 = vld [vmem:[#allocation2 + $0xf0] sm:$0xff] }
  0x1d   :  { %139 = vmatprep.mubr.f32.mxu1 %v37_v34  ;;  %v214_v44 = vpack.c.bf16 %v67_v42, %v66_v41  ;;  %v51_v46 = vld [vmem:[#allocation2 + $0x68] sm:$0xff]  ;;  %v69_v48 = vld [vmem:[#allocation2 + $0xf8] sm:$0xff]  ;;  %v52_v51 = vld [vmem:[#allocation2 + $0x70] sm:$0xff] }
  0x1e   :  { %201 = vmatpush3.bf16.msra.mxu0 %v200_v19  ;;  %232 = vmatpush3.bf16.msra.mxu1 %v200_v19  ;;  %v216_v49 = vpack.c.bf16 %v51_v46, %v50_v45  ;;  %v218_v50 = vpack.c.bf16 %v69_v48, %v68_v47  ;;  %v53_v52 = vld [vmem:[#allocation2 + $0x78] sm:$0xff]  ;;  %v30_v54 = vld [vmem:[%s325_s1] sm:$0xff]  ;;  %v32_v55 = vld [vmem:[%s325_s1 + $0x10] sm:$0xff] }
  0x1f   :  { %203 = vmatprep.subr.bf16.mxu0 %v202_v20  ;;  %225 = vmatprep.subr.bf16.mxu1 %v202_v20  ;;  %v220_v53 = vpack.c.bf16 %v53_v52, %v52_v51  ;;  %v34_v56 = vmul.f32 %v30_v54, %v28_v25  ;;  %v35_v57 = vmul.f32 %v32_v55, %v29_v27 }
  0x22   :  { %205 = vmatpush3.bf16.msra.mxu0 %v204_v28  ;;  %233 = vmatpush3.bf16.msra.mxu1 %v204_v28 }
  0x23   :  { %207 = vmatprep.subr.bf16.mxu0 %v206_v31  ;;  %226 = vmatprep.subr.bf16.mxu1 %v206_v31 }
  0x26   :  { %209 = vmatpush3.bf16.msra.mxu0 %v208_v37  ;;  %234 = vmatpush3.bf16.msra.mxu1 %v208_v37 }
  0x27   :  { %211 = vmatprep.subr.bf16.mxu0 %v210_v38  ;;  %227 = vmatprep.subr.bf16.mxu1 %v210_v38 }
  0x2a   :  { %213 = vmatpush3.bf16.msra.mxu0 %v212_v43  ;;  %235 = vmatpush3.bf16.msra.mxu1 %v212_v43 }
  0x2b   :  { %215 = vmatprep.subr.bf16.mxu0 %v214_v44  ;;  %228 = vmatprep.subr.bf16.mxu1 %v214_v44 }
  0x2e   :  { %217 = vmatpush3.bf16.msra.mxu0 %v216_v49  ;;  %236 = vmatpush3.bf16.msra.mxu1 %v216_v49 }
  0x2f   :  { %219 = vmatprep.subr.bf16.mxu0 %v218_v50  ;;  %229 = vmatprep.subr.bf16.mxu1 %v218_v50 }
  0x32   :  { %221 = vmatpush3.bf16.msra.mxu0 %v220_v53  ;;  %237 = vmatpush3.bf16.msra.mxu1 %v220_v53 }
  0x35   :  { %135 = vmatmul.mubr.f32.vlgmr.msra.gmra.mrb[0].mxu0 %v34_v56  ;;  %140 = vmatmul.mubr.f32.vlgmr.msra.gmra.mrb[0].mxu1 %v35_v57 }
 0x108   :  { %v184_v58 = vpop.f32.mrb[0].mxu0  ;;  %v187_v59 = vpop.f32.mrb[0].mxu1 }
 0x109   :  { %v185_v60 = vpop.f32.mrb[1].mxu0  ;;  %v188_v61 = vpop.f32.mrb[1].mxu1 }
 0x10a   :  { %v186_v62 = vadd.f32 %v185_v60, %v184_v58  ;;  %v189_v63 = vadd.f32 %v188_v61, %v187_v59 }
 0x10c   :  { %145 = vst [vmem:[%s327_s3] sm:$0xff] %v186_v62  ;;  %146 = vst [vmem:[%s327_s3 + $0x8] sm:$0xff] %v189_v63 }
 0x10d   :  { %151 = vsyncpa [#allocation3], 1 }

// kernel: a_call__.3
= control target key start
LH: loop header
LB: loop body
LE: loop exit
PB: predicated region body
PF: predicated region fallthrough
CT: control target
= control target key end

     0   :  { %s363_s2 = inlined_call_operand.vmem [shape: f32[256,128], index: 2, kind: input, shape index: {}]   ;;  %s364_s0 = inlined_call_operand.vmem [shape: f32[16,128], index: 0, kind: input, shape index: {}]   ;;  %s365_s1 = inlined_call_operand.vmem [shape: f32[16,256], index: 1, kind: input, shape index: {}]   ;;  %s366_s3 = inlined_call_operand.vmem [shape: f32[16,128], index: 3, kind: output, shape index: {}]  }
   0x1   :  { %v40_v0 = vld [vmem:[%s363_s2 + $0x80] sm:$0xff]  ;;  %v41_v1 = vld [vmem:[%s363_s2 + $0x88] sm:$0xff]  ;;  %v42_v5 = vld [vmem:[%s363_s2 + $0x90] sm:$0xff] }
   0x2   :  { %v24_v2 = vld [vmem:[%s363_s2] sm:$0xff]  ;;  %v175_v3 = vpack.c.bf16 %v41_v1, %v40_v0  ;;  %v25_v4 = vld [vmem:[%s363_s2 + $0x8] sm:$0xff]  ;;  %v43_v6 = vld [vmem:[%s363_s2 + $0x98] sm:$0xff] }
   0x3   :  { %v177_v7 = vpack.c.bf16 %v25_v4, %v24_v2  ;;  %v179_v8 = vpack.c.bf16 %v43_v6, %v42_v5  ;;  %v26_v9 = vld [vmem:[%s363_s2 + $0x10] sm:$0xff]  ;;  %v27_v10 = vld [vmem:[%s363_s2 + $0x18] sm:$0xff]  ;;  %v44_v11 = vld [vmem:[%s363_s2 + $0xa0] sm:$0xff] }
   0x4   :  { %176 = vmatprep.subr.bf16.mxu0 %v175_v3  ;;  %207 = vmatprep.subr.bf16.mxu1 %v175_v3  ;;  %v45_v12 = vld [vmem:[%s363_s2 + $0xa8] sm:$0xff]  ;;  %v181_v13 = vpack.c.bf16 %v27_v10, %v26_v9  ;;  %v28_v15 = vld [vmem:[%s363_s2 + $0x20] sm:$0xff]  ;;  %v46_v17 = vld [vmem:[%s363_s2 + $0xb0] sm:$0xff] }
   0x5   :  { %178 = vmatpush3.bf16.msra.mxu0 %v177_v7  ;;  %215 = vmatpush3.bf16.msra.mxu1 %v177_v7  ;;  %v183_v14 = vpack.c.bf16 %v45_v12, %v44_v11  ;;  %v29_v16 = vld [vmem:[%s363_s2 + $0x28] sm:$0xff]  ;;  %v47_v18 = vld [vmem:[%s363_s2 + $0xb8] sm:$0xff]  ;;  %v30_v21 = vld [vmem:[%s363_s2 + $0x30] sm:$0xff] }
   0x6   :  { %180 = vmatprep.subr.bf16.mxu0 %v179_v8  ;;  %208 = vmatprep.subr.bf16.mxu1 %v179_v8  ;;  %v185_v19 = vpack.c.bf16 %v29_v16, %v28_v15  ;;  %v187_v20 = vpack.c.bf16 %v47_v18, %v46_v17  ;;  %v31_v22 = vld [vmem:[%s363_s2 + $0x38] sm:$0xff]  ;;  %v48_v23 = vld [vmem:[%s363_s2 + $0xc0] sm:$0xff]  ;;  %v49_v24 = vld [vmem:[%s363_s2 + $0xc8] sm:$0xff] }
   0x7   :  { %v14_v25 = vld [vmem:[%s364_s0] sm:$0xff]  ;;  %v17_v26 = vld [vmem:[%s365_s1 + $0x8] sm:$0xff]  ;;  %v189_v28 = vpack.c.bf16 %v31_v22, %v30_v21  ;;  %v19_v30 = vld [vmem:[%s365_s1 + $0x18] sm:$0xff]  ;;  %v191_v31 = vpack.c.bf16 %v49_v24, %v48_v23 }
   0x8   :  { %v15_v27 = vld [vmem:[%s364_s0 + $0x8] sm:$0xff]  ;;  %v22_v29 = vmul.f32 %v17_v26, %v14_v25  ;;  %v32_v32 = vld [vmem:[%s363_s2 + $0x40] sm:$0xff]  ;;  %v50_v35 = vld [vmem:[%s363_s2 + $0xd0] sm:$0xff] }
   0x9   :  { %182 = vmatpush3.bf16.msra.mxu0 %v181_v13  ;;  %216 = vmatpush3.bf16.msra.mxu1 %v181_v13  ;;  %v33_v33 = vld [vmem:[%s363_s2 + $0x48] sm:$0xff]  ;;  %v23_v34 = vmul.f32 %v19_v30, %v15_v27  ;;  %v51_v36 = vld [vmem:[%s363_s2 + $0xd8] sm:$0xff]  ;;  %v34_v39 = vld [vmem:[%s363_s2 + $0x50] sm:$0xff] }
   0xa   :  { %184 = vmatprep.subr.bf16.mxu0 %v183_v14  ;;  %209 = vmatprep.subr.bf16.mxu1 %v183_v14  ;;  %v193_v37 = vpack.c.bf16 %v33_v33, %v32_v32  ;;  %v195_v38 = vpack.c.bf16 %v51_v36, %v50_v35  ;;  %v35_v40 = vld [vmem:[%s363_s2 + $0x58] sm:$0xff]  ;;  %v52_v41 = vld [vmem:[%s363_s2 + $0xe0] sm:$0xff]  ;;  %v53_v42 = vld [vmem:[%s363_s2 + $0xe8] sm:$0xff] }
   0xb   :  { %120 = vmatprep.mubr.f32.mxu0 %v22_v29  ;;  %125 = vmatprep.mubr.f32.mxu1 %v23_v34  ;;  %v197_v43 = vpack.c.bf16 %v35_v40, %v34_v39  ;;  %v199_v44 = vpack.c.bf16 %v53_v42, %v52_v41  ;;  %v36_v45 = vld [vmem:[%s363_s2 + $0x60] sm:$0xff]  ;;  %v37_v46 = vld [vmem:[%s363_s2 + $0x68] sm:$0xff]  ;;  %v54_v47 = vld [vmem:[%s363_s2 + $0xf0] sm:$0xff] }
   0xc   :  { %v55_v48 = vld [vmem:[%s363_s2 + $0xf8] sm:$0xff]  ;;  %v201_v49 = vpack.c.bf16 %v37_v46, %v36_v45  ;;  %v38_v51 = vld [vmem:[%s363_s2 + $0x70] sm:$0xff]  ;;  %v16_v54 = vld [vmem:[%s365_s1] sm:$0xff] }
   0xd   :  { %186 = vmatpush3.bf16.msra.mxu0 %v185_v19  ;;  %217 = vmatpush3.bf16.msra.mxu1 %v185_v19  ;;  %v203_v50 = vpack.c.bf16 %v55_v48, %v54_v47  ;;  %v39_v52 = vld [vmem:[%s363_s2 + $0x78] sm:$0xff]  ;;  %v18_v55 = vld [vmem:[%s365_s1 + $0x10] sm:$0xff]  ;;  %v20_v56 = vmul.f32 %v16_v54, %v14_v25 }
   0xe   :  { %188 = vmatprep.subr.bf16.mxu0 %v187_v20  ;;  %210 = vmatprep.subr.bf16.mxu1 %v187_v20  ;;  %v205_v53 = vpack.c.bf16 %v39_v52, %v38_v51  ;;  %v21_v57 = vmul.f32 %v18_v55, %v15_v27 }
  0x11   :  { %190 = vmatpush3.bf16.msra.mxu0 %v189_v28  ;;  %218 = vmatpush3.bf16.msra.mxu1 %v189_v28 }
  0x12   :  { %192 = vmatprep.subr.bf16.mxu0 %v191_v31  ;;  %211 = vmatprep.subr.bf16.mxu1 %v191_v31 }
  0x15   :  { %194 = vmatpush3.bf16.msra.mxu0 %v193_v37  ;;  %219 = vmatpush3.bf16.msra.mxu1 %v193_v37 }
  0x16   :  { %196 = vmatprep.subr.bf16.mxu0 %v195_v38  ;;  %212 = vmatprep.subr.bf16.mxu1 %v195_v38 }
  0x19   :  { %198 = vmatpush3.bf16.msra.mxu0 %v197_v43  ;;  %220 = vmatpush3.bf16.msra.mxu1 %v197_v43 }
  0x1a   :  { %200 = vmatprep.subr.bf16.mxu0 %v199_v44  ;;  %213 = vmatprep.subr.bf16.mxu1 %v199_v44 }
  0x1d   :  { %202 = vmatpush3.bf16.msra.mxu0 %v201_v49  ;;  %221 = vmatpush3.bf16.msra.mxu1 %v201_v49 }
  0x1e   :  { %204 = vmatprep.subr.bf16.mxu0 %v203_v50  ;;  %214 = vmatprep.subr.bf16.mxu1 %v203_v50 }
  0x21   :  { %206 = vmatpush3.bf16.msra.mxu0 %v205_v53  ;;  %222 = vmatpush3.bf16.msra.mxu1 %v205_v53 }
  0x24   :  { %121 = vmatmul.mubr.f32.vlgmr.msra.gmra.mrb[0].mxu0 %v20_v56  ;;  %126 = vmatmul.mubr.f32.vlgmr.msra.gmra.mrb[0].mxu1 %v21_v57 }
  0xf7   :  { %v169_v58 = vpop.f32.mrb[0].mxu0  ;;  %v172_v59 = vpop.f32.mrb[0].mxu1 }
  0xf8   :  { %v170_v60 = vpop.f32.mrb[1].mxu0  ;;  %v173_v61 = vpop.f32.mrb[1].mxu1 }
  0xf9   :  { %v171_v62 = vadd.f32 %v170_v60, %v169_v58  ;;  %v174_v63 = vadd.f32 %v173_v61, %v172_v59 }
  0xfb   :  { %131 = vst [vmem:[%s366_s3] sm:$0xff] %v171_v62  ;;  %132 = vst [vmem:[%s366_s3 + $0x8] sm:$0xff] %v174_v63 }

// kernel: closed_call.17
= control target key start
LH: loop header
LB: loop body
LE: loop exit
PB: predicated region body
PF: predicated region fallthrough
CT: control target
= control target key end

     0   :  { %v240_v3 = vmov 0.0   ;;  %s404_s1 = inlined_call_operand.vmem [shape: f32[128,256], index: 1, kind: input, shape index: {}]   ;;  %s405_s0 = inlined_call_operand.vmem [shape: f32[16,128], index: 0, kind: input, shape index: {}]   ;;  %s406_s2 = inlined_call_operand.vmem [shape: f32[16,256], index: 2, kind: input, shape index: {}]   ;;  %s407_s3 = inlined_call_operand.vmem [shape: f32[16,256], index: 3, kind: output, shape index: {0}]   ;;  %s408_s4 = inlined_call_operand.vmem [shape: f32[16,256], index: 4, kind: output, shape index: {1}]  }
   0x1   :  { %v19_v0 = vld [vmem:[%s404_s1 + $0x8] sm:$0xff]  ;;  %v21_v1 = vld [vmem:[%s404_s1 + $0x18] sm:$0xff]  ;;  %v18_v2 = vld [vmem:[%s404_s1] sm:$0xff]  ;;  %114 = vmatprep.mubr.f32.mxu0 %v240_v3  ;;  %120 = vmatprep.mubr.f32.mxu1 %v240_v3 }
   0x2   :  { %v183_v4 = vpack.c.bf16 %v21_v1, %v19_v0  ;;  %v20_v5 = vld [vmem:[%s404_s1 + $0x10] sm:$0xff]  ;;  %v23_v6 = vld [vmem:[%s404_s1 + $0x28] sm:$0xff]  ;;  %v25_v7 = vld [vmem:[%s404_s1 + $0x38] sm:$0xff] }
   0x3   :  { %v185_v8 = vpack.c.bf16 %v20_v5, %v18_v2  ;;  %v187_v9 = vpack.c.bf16 %v25_v7, %v23_v6  ;;  %v22_v10 = vld [vmem:[%s404_s1 + $0x20] sm:$0xff]  ;;  %v24_v11 = vld [vmem:[%s404_s1 + $0x30] sm:$0xff]  ;;  %v27_v12 = vld [vmem:[%s404_s1 + $0x48] sm:$0xff] }
   0x4   :  { %184 = vmatprep.subr.bf16.mxu0 %v183_v4  ;;  %215 = vmatprep.subr.bf16.mxu1 %v183_v4  ;;  %v29_v13 = vld [vmem:[%s404_s1 + $0x58] sm:$0xff]  ;;  %v189_v14 = vpack.c.bf16 %v24_v11, %v22_v10  ;;  %v26_v16 = vld [vmem:[%s404_s1 + $0x40] sm:$0xff]  ;;  %v28_v17 = vld [vmem:[%s404_s1 + $0x50] sm:$0xff] }
   0x5   :  { %186 = vmatpush1.bf16.msra.mxu0 %v185_v8  ;;  %223 = vmatpush1.bf16.msra.mxu1 %v185_v8  ;;  %v191_v15 = vpack.c.bf16 %v29_v13, %v27_v12  ;;  %v31_v18 = vld [vmem:[%s404_s1 + $0x68] sm:$0xff]  ;;  %v33_v19 = vld [vmem:[%s404_s1 + $0x78] sm:$0xff]  ;;  %v193_v20 = vpack.c.bf16 %v28_v17, %v26_v16  ;;  %v30_v22 = vld [vmem:[%s404_s1 + $0x60] sm:$0xff] }
   0x6   :  { %188 = vmatprep.subr.bf16.mxu0 %v187_v9  ;;  %216 = vmatprep.subr.bf16.mxu1 %v187_v9  ;;  %v195_v21 = vpack.c.bf16 %v33_v19, %v31_v18  ;;  %v32_v23 = vld [vmem:[%s404_s1 + $0x70] sm:$0xff]  ;;  %v35_v24 = vld [vmem:[%s404_s1 + $0x88] sm:$0xff]  ;;  %v37_v25 = vld [vmem:[%s404_s1 + $0x98] sm:$0xff] }
   0x7   :  { %v197_v26 = vpack.c.bf16 %v32_v23, %v30_v22  ;;  %v199_v27 = vpack.c.bf16 %v37_v25, %v35_v24  ;;  %v34_v28 = vld [vmem:[%s404_s1 + $0x80] sm:$0xff]  ;;  %v36_v29 = vld [vmem:[%s404_s1 + $0x90] sm:$0xff]  ;;  %v39_v30 = vld [vmem:[%s404_s1 + $0xa8] sm:$0xff] }
   0x8   :  { %v41_v31 = vld [vmem:[%s404_s1 + $0xb8] sm:$0xff]  ;;  %v201_v32 = vpack.c.bf16 %v36_v29, %v34_v28  ;;  %v38_v34 = vld [vmem:[%s404_s1 + $0xa0] sm:$0xff]  ;;  %v40_v35 = vld [vmem:[%s404_s1 + $0xb0] sm:$0xff] }
   0x9   :  { %190 = vmatpush1.bf16.msra.mxu0 %v189_v14  ;;  %224 = vmatpush1.bf16.msra.mxu1 %v189_v14  ;;  %v203_v33 = vpack.c.bf16 %v41_v31, %v39_v30  ;;  %v43_v36 = vld [vmem:[%s404_s1 + $0xc8] sm:$0xff]  ;;  %v45_v37 = vld [vmem:[%s404_s1 + $0xd8] sm:$0xff]  ;;  %v205_v38 = vpack.c.bf16 %v40_v35, %v38_v34  ;;  %v42_v40 = vld [vmem:[%s404_s1 + $0xc0] sm:$0xff] }
   0xa   :  { %192 = vmatprep.subr.bf16.mxu0 %v191_v15  ;;  %217 = vmatprep.subr.bf16.mxu1 %v191_v15  ;;  %v207_v39 = vpack.c.bf16 %v45_v37, %v43_v36  ;;  %v44_v41 = vld [vmem:[%s404_s1 + $0xd0] sm:$0xff]  ;;  %v47_v42 = vld [vmem:[%s404_s1 + $0xe8] sm:$0xff]  ;;  %v49_v43 = vld [vmem:[%s404_s1 + $0xf8] sm:$0xff] }
   0xb   :  { %v209_v44 = vpack.c.bf16 %v44_v41, %v42_v40  ;;  %v211_v45 = vpack.c.bf16 %v49_v43, %v47_v42  ;;  %v46_v46 = vld [vmem:[%s404_s1 + $0xe0] sm:$0xff]  ;;  %v48_v47 = vld [vmem:[%s404_s1 + $0xf0] sm:$0xff]  ;;  %v17_v50 = vld [vmem:[%s405_s0 + $0x8] sm:$0xff] }
   0xc   :  { %v213_v48 = vpack.c.bf16 %v48_v47, %v46_v46  ;;  %v16_v49 = vld [vmem:[%s405_s0] sm:$0xff]  ;;  %v133_v52 = vld [vmem:[%s406_s2 + $0x10] sm:$0xff]  ;;  %v132_v53 = vld [vmem:[%s406_s2 + $0x8] sm:$0xff] }
   0xd   :  { %194 = vmatpush1.bf16.msra.mxu0 %v193_v20  ;;  %225 = vmatpush1.bf16.msra.mxu1 %v193_v20  ;;  %v131_v51 = vld [vmem:[%s406_s2] sm:$0xff]  ;;  %v134_v54 = vld [vmem:[%s406_s2 + $0x18] sm:$0xff]  ;;  %v137_v56 = vmul.f32 0.49748743, %v133_v52  ;;  %v136_v57 = vmul.f32 0.49748743, %v132_v53 }
   0xe   :  { %196 = vmatprep.subr.bf16.mxu0 %v195_v21  ;;  %218 = vmatprep.subr.bf16.mxu1 %v195_v21  ;;  %v135_v55 = vmul.f32 0.49748743, %v131_v51  ;;  %v138_v58 = vmul.f32 0.49748743, %v134_v54 }
  0x11   :  { %198 = vmatpush1.bf16.msra.mxu0 %v197_v26  ;;  %226 = vmatpush1.bf16.msra.mxu1 %v197_v26 }
  0x12   :  { %200 = vmatprep.subr.bf16.mxu0 %v199_v27  ;;  %219 = vmatprep.subr.bf16.mxu1 %v199_v27 }
  0x15   :  { %202 = vmatpush1.bf16.msra.mxu0 %v201_v32  ;;  %227 = vmatpush1.bf16.msra.mxu1 %v201_v32 }
  0x16   :  { %204 = vmatprep.subr.bf16.mxu0 %v203_v33  ;;  %220 = vmatprep.subr.bf16.mxu1 %v203_v33 }
  0x19   :  { %206 = vmatpush1.bf16.msra.mxu0 %v205_v38  ;;  %228 = vmatpush1.bf16.msra.mxu1 %v205_v38 }
  0x1a   :  { %208 = vmatprep.subr.bf16.mxu0 %v207_v39  ;;  %221 = vmatprep.subr.bf16.mxu1 %v207_v39 }
  0x1d   :  { %210 = vmatpush1.bf16.msra.mxu0 %v209_v44  ;;  %229 = vmatpush1.bf16.msra.mxu1 %v209_v44 }
  0x1e   :  { %212 = vmatprep.subr.bf16.mxu0 %v211_v45  ;;  %222 = vmatprep.subr.bf16.mxu1 %v211_v45 }
  0x21   :  { %214 = vmatpush1.bf16.msra.mxu0 %v213_v48  ;;  %230 = vmatpush1.bf16.msra.mxu1 %v213_v48 }
  0x24   :  { %115 = vmatmul.mubr.f32.vlgmr.msra.gmra.mrb[0].mxu0 %v16_v49  ;;  %121 = vmatmul.mubr.f32.vlgmr.msra.gmra.mrb[0].mxu1 %v17_v50 }
  0xf7   :  { %v116_v59 = vpop.f32.mrb[0].mxu0  ;;  %v122_v60 = vpop.f32.mrb[0].mxu1 }
  0xf8   :  { %127 = vst [vmem:[%s407_s3] sm:$0xff] %v116_v59  ;;  %v139_v61 = vsub.f32 %v116_v59, %v135_v55  ;;  %129 = vst [vmem:[%s407_s3 + $0x10] sm:$0xff] %v122_v60  ;;  %v141_v62 = vsub.f32 %v122_v60, %v137_v56  ;;  %v118_v63 = vpop.f32.mrb[1].mxu0  ;;  %v124_v0 = vpop.f32.mrb[1].mxu1 }
  0xf9   :  { %128 = vst [vmem:[%s407_s3 + $0x8] sm:$0xff] %v118_v63  ;;  %v140_v1 = vsub.f32 %v118_v63, %v136_v57  ;;  %130 = vst [vmem:[%s407_s3 + $0x18] sm:$0xff] %v124_v0  ;;  %v142_v2 = vsub.f32 %v124_v0, %v138_v58 }
  0xfa   :  { %v143_v3 = vmul.f32 %v139_v61, %v139_v61  ;;  %v144_v4 = vmul.f32 %v141_v62, %v141_v62 }
  0xfb   :  { %v145_v5 = vmul.f32 %v140_v1, %v140_v1  ;;  %v146_v6 = vmul.f32 %v142_v2, %v142_v2 }
  0xfd   :  { %v147_v7 = vadd.f32 %v145_v5, %v143_v3  ;;  %v148_v8 = vadd.f32 %v146_v6, %v144_v4 }
  0xff   :  { %232 = vrsqrt.f32 %v147_v7  ;;  %vm151_vm0 = vcmp.eq.f32.partialorder %v147_v7, inf  ;;  %v154_v12 = vand.u32 2147483648, %v147_v7  ;;  %vm153_vm1 = vcmp.eq.f32.partialorder %v147_v7, 0.0 }
 0x100   :  { %234 = vrsqrt.f32 %v148_v8  ;;  %vm158_vm2 = vcmp.eq.f32.partialorder %v148_v8, inf  ;;  %v161_v15 = vand.u32 2147483648, %v148_v8  ;;  %vm160_vm3 = vcmp.eq.f32.partialorder %v148_v8, 0.0 }
 0x109   :  { %v233_v9 = vpop.eup %232 }
 0x10a   :  { %v235_v10 = vpop.eup %234  ;;  %v150_v11 = vmul.f32 %v233_v9, %v147_v7 }
 0x10b   :  { %v157_v13 = vmul.f32 %v235_v10, %v148_v8 }
 0x10c   :  { %v152_v14 = vsel %vm151_vm0, %v147_v7, %v150_v11 }
 0x10d   :  { %v155_v16 = vsel %vm153_vm1, %v154_v12, %v152_v14  ;;  %v159_v17 = vsel %vm158_vm2, %v148_v8, %v157_v13 }
 0x10e   :  { %v163_v18 = vadd.f32 1e-16, %v155_v16  ;;  %v162_v19 = vsel %vm160_vm3, %v161_v15, %v159_v17 }
 0x10f   :  { %v164_v20 = vadd.f32 1e-16, %v162_v19 }
 0x110   :  { %236 = vrcp.f32 %v163_v18 }
 0x111   :  { %238 = vrcp.f32 %v164_v20 }
 0x11a   :  { %v237_v21 = vpop.eup %236 }
 0x11b   :  { %v239_v22 = vpop.eup %238  ;;  %v167_v23 = vmul.f32 %v237_v21, %v139_v61  ;;  %v169_v24 = vmul.f32 %v237_v21, %v140_v1 }
 0x11c   :  { %v168_v25 = vmul.f32 %v239_v22, %v141_v62  ;;  %v170_v26 = vmul.f32 %v239_v22, %v142_v2 }
 0x11d   :  { %171 = vst [vmem:[%s408_s4] sm:$0xff] %v167_v23  ;;  %172 = vst [vmem:[%s408_s4 + $0x8] sm:$0xff] %v169_v24 }
 0x11e   :  { %173 = vst [vmem:[%s408_s4 + $0x10] sm:$0xff] %v168_v25  ;;  %174 = vst [vmem:[%s408_s4 + $0x18] sm:$0xff] %v170_v26 }

</bundles_post_ra>
